<compile_context>
chip_gen: v5e
topology: v5e:2x2
jax: 0.10.0
libtpu: 0.0.40
codegen_flags: <defaults>
</compile_context>

<pallas_src>
import functools

import jax
import jax.numpy as jnp
from jax.experimental import pallas as pl
from jax.experimental.pallas import tpu as pltpu


def _mlp_kernel(xT_ref, w1_ref, b1_ref, w2_ref, b2_ref, o_ref, *, use_mxu):
    """One batch tile of y^T = W2 @ relu(W1 @ x^T + b1) + b2.

    xT_ref: (S_pad, TB) VMEM -- inputs, batch on the 128-lane axis (S zero-padded)
    w1_ref: (H, S_pad)  VMEM -- first Linear weight, PyTorch (out, in) layout (padded)
    b1_ref: (H, 1)      VMEM -- first Linear bias as a column
    w2_ref: (H, A)      VMEM -- second Linear weight, transposed to (in, out)
    b2_ref: (A,)        SMEM -- second Linear bias (scalar per output feature)
    o_ref : (A, TB)     VMEM -- output, batch on the lane axis (lane-dense store)
    """
    xT = xT_ref[...]                                   # (S_pad, TB)
    w1 = w1_ref[...]                                   # (H, S_pad)
    w2 = w2_ref[...]                                   # (H, A)
    A = w2.shape[1]

    # ---- Layer 1: h = relu(W1 @ x^T + b1) ----
    if use_mxu:
        # K = S_pad = 8, M = 64, N = TB f32 matmul on the (otherwise idle) MXU.
        acc = jnp.dot(w1, xT, preferred_element_type=jnp.float32)   # (H, TB)
    else:
        # VPU fallback: unrolled outer-product accumulation over the tiny S.
        acc = w1[:, 0:1] * xT[0:1, :]
        for k in range(1, w1.shape[1]):
            acc = acc + w1[:, k:k + 1] * xT[k:k + 1, :]
    h = jnp.maximum(acc + b1_ref[...], 0.0)            # ReLU; bias broadcast over lanes

    # ---- Layer 2: contraction over H via VPU multiply + XLU sublane reduce ----
    if A == 1:
        row = jnp.sum(h * w2, axis=0, keepdims=True) + b2_ref[0]     # (1, TB)
        o_ref[...] = row.astype(o_ref.dtype)           # single unmasked full-lane store
    else:
        for a in range(A):                             # static slices; A is tiny
            row = jnp.sum(h * w2[:, a:a + 1], axis=0, keepdims=True) + b2_ref[a]
            o_ref[a:a + 1, :] = row.astype(o_ref.dtype)


def _choose_batch_tiling(B, max_batch_tile):
    """Pick (TB, num_tiles) with TB a multiple of 128 and num_tiles >= 2 when
    there is enough batch to feed both TensorCores on v7x."""
    B128 = pl.cdiv(B, 128) * 128
    num_tiles = max(1, pl.cdiv(B128, max_batch_tile))
    if B128 >= 256:
        num_tiles = max(num_tiles, 2)                  # keep both v7x TCs busy
        if num_tiles % 2:
            num_tiles += 1
    TB = min(max_batch_tile, pl.cdiv(pl.cdiv(B128, num_tiles), 128) * 128)
    num_tiles = pl.cdiv(B128, TB)
    return TB, num_tiles


def reward_net_2_forward(x, w1, b1, w2, b2, *, max_batch_tile=8192, use_mxu=True):
    """Forward pass of reward_net_2 (Linear(5,64) -> ReLU -> Linear(64,1)).

    x : (B, S) float32
    w1: (H, S) float32   (PyTorch nn.Linear weight layout)
    b1: (H,)   float32
    w2: (A, H) float32
    b2: (A,)   float32
    returns (B, A) float32
    """
    B, S = x.shape
    H = w1.shape[0]
    A = w2.shape[0]
    assert max_batch_tile % 128 == 0

    TB, num_tiles = _choose_batch_tiling(B, max_batch_tile)
    B_pad = num_tiles * TB
    S_pad = pl.cdiv(S, 8) * 8                          # pad feature dim 5 -> 8 (zeros)

    # Single fused transpose+pad copy of x (lane-dense batch layout).
    # Keeping the activation feature-major upstream would remove this HBM pass.
    xT = jnp.pad(x.T, ((0, S_pad - S), (0, B_pad - B)))          # (S_pad, B_pad)
    w1p = jnp.pad(w1, ((0, 0), (0, S_pad - S)))                  # (H, S_pad)
    b1c = b1.reshape(H, 1)                                       # column for lane-broadcast
    w2c = w2.T                                                   # (H, A)

    kernel = functools.partial(_mlp_kernel, use_mxu=use_mxu)

    yT = pl.pallas_call(
        kernel,
        out_shape=jax.ShapeDtypeStruct((A, B_pad), x.dtype),
        grid_spec=pltpu.PrefetchScalarGridSpec(
            num_scalar_prefetch=0,
            grid=(num_tiles,),
            in_specs=[
                pl.BlockSpec((S_pad, TB), lambda i: (0, i)),     # x^T, tiled over batch
                pl.BlockSpec((H, S_pad), lambda i: (0, 0)),      # W1 (resident)
                pl.BlockSpec((H, 1), lambda i: (0, 0)),          # b1
                pl.BlockSpec((H, A), lambda i: (0, 0)),          # W2^T
                pl.BlockSpec(memory_space=pltpu.MemorySpace.SMEM),  # b2 scalar(s)
            ],
            out_specs=pl.BlockSpec((A, TB), lambda i: (0, i)),
        ),
        compiler_params=pltpu.CompilerParams(
            # Batch tiles are independent -> shard across TensorCores (v7x).
            dimension_semantics=("parallel",),
        ),
    )(xT, w1p, b1c, w2c, b2)

    return yT[:, :B].T                                 # back to PyTorch layout (B, A)


if __name__ == "__main__":
    input_feature = 5
    hidden = 64
    output_feature = 1
    batch = 8

    key = jax.random.PRNGKey(0)
    k_x, k_w1, k_b1, k_w2, k_b2 = jax.random.split(key, 5)

    # PyTorch nn.Linear default init: U(-1/sqrt(fan_in), 1/sqrt(fan_in))
    bound1 = 1.0 / (input_feature ** 0.5)
    w1 = jax.random.uniform(k_w1, (hidden, input_feature),
                            minval=-bound1, maxval=bound1, dtype=jnp.float32)
    b1 = jax.random.uniform(k_b1, (hidden,),
                            minval=-bound1, maxval=bound1, dtype=jnp.float32)
    bound2 = 1.0 / (hidden ** 0.5)
    w2 = jax.random.uniform(k_w2, (output_feature, hidden),
                            minval=-bound2, maxval=bound2, dtype=jnp.float32)
    b2 = jax.random.uniform(k_b2, (output_feature,),
                            minval=-bound2, maxval=bound2, dtype=jnp.float32)

    x = jax.random.normal(k_x, (batch, input_feature), dtype=jnp.float32)

    # Pure-JAX reference (same math as the PyTorch Sequential)
    def ref(xx):
        return jnp.maximum(xx @ w1.T + b1, 0.0) @ w2.T + b2

    # Small batch, MXU layer-1 path.
    y = jax.block_until_ready(reward_net_2_forward(x, w1, b1, w2, b2))
    assert y.shape == (batch, output_feature)
    assert jnp.allclose(y, ref(x), atol=1e-5, rtol=1e-5)

    # Small batch, VPU fallback path.
    y_vpu = jax.block_until_ready(
        reward_net_2_forward(x, w1, b1, w2, b2, use_mxu=False))
    assert jnp.allclose(y_vpu, ref(x), atol=1e-5, rtol=1e-5)

    # Larger, non-multiple-of-128 batch: exercises multi-tile grid + padding.
    xb = jax.random.normal(k_x, (1000, input_feature), dtype=jnp.float32)
    yb = jax.block_until_ready(reward_net_2_forward(xb, w1, b1, w2, b2))
    assert yb.shape == (1000, output_feature)
    assert jnp.allclose(yb, ref(xb), atol=1e-5, rtol=1e-5)

    print("KERNEL_OK")
</pallas_src>

<mosaic_0001>
module attributes {stable_mosaic.version = 11 : i64} {
  func.func @_mlp_kernel(%arg0: i32, %arg1: memref<8x128xf32, #tpu.memory_space<vmem>>, %arg2: memref<64x8xf32, #tpu.memory_space<vmem>>, %arg3: memref<64x1xf32, #tpu.memory_space<vmem>>, %arg4: memref<64x1xf32, #tpu.memory_space<vmem>>, %arg5: memref<1xf32, #tpu.memory_space<smem>>, %arg6: memref<1x128xf32, #tpu.memory_space<vmem>>) attributes {dimension_semantics = [#tpu.dimension_semantics<parallel>], iteration_bounds = array<i64: 1>, scalar_prefetch = 0 : i64, scratch_operands = 0 : i64, tpu.core_type = #tpu.core_type<tc>, window_params = [{transform_indices = @transform_0, window_bounds = array<i64: 8, 128>}, {pipeline_mode = #tpu.pipeline_mode<synchronous>, transform_indices = @transform_1, window_bounds = array<i64: 64, 8>}, {pipeline_mode = #tpu.pipeline_mode<synchronous>, transform_indices = @transform_2, window_bounds = array<i64: 64, 1>}, {pipeline_mode = #tpu.pipeline_mode<synchronous>, transform_indices = @transform_3, window_bounds = array<i64: 64, 1>}, {transform_indices = @transform_4, window_bounds = array<i64: 1>}, {transform_indices = @transform_5, window_bounds = array<i64: 1, 128>}]} {
    %c0 = arith.constant 0 : index
    %c0_0 = arith.constant 0 : index
    %0 = vector.load %arg1[%c0, %c0_0] : memref<8x128xf32, #tpu.memory_space<vmem>>, vector<8x128xf32>
    %c0_1 = arith.constant 0 : index
    %c0_2 = arith.constant 0 : index
    %1 = vector.load %arg2[%c0_1, %c0_2] : memref<64x8xf32, #tpu.memory_space<vmem>>, vector<64x8xf32>
    %c0_3 = arith.constant 0 : index
    %c0_4 = arith.constant 0 : index
    %2 = vector.load %arg4[%c0_3, %c0_4] : memref<64x1xf32, #tpu.memory_space<vmem>>, vector<64x1xf32>
    %cst = arith.constant dense<0.000000e+00> : vector<64x128xf32>
    %3 = tpu.matmul %1, %0, %cst {dimension_numbers = #tpu.dot_dimension_numbers<[1], [0], [0], [1], [0, 0, 1, 1], [], []>} : vector<64x8xf32>, vector<8x128xf32>, vector<64x128xf32> -> vector<64x128xf32>
    %c0_5 = arith.constant 0 : index
    %c0_6 = arith.constant 0 : index
    %4 = vector.load %arg3[%c0_5, %c0_6] : memref<64x1xf32, #tpu.memory_space<vmem>>, vector<64x1xf32>
    %5 = vector.broadcast %4 : vector<64x1xf32> to vector<64x128xf32>
    %6 = arith.addf %3, %5 : vector<64x128xf32>
    %cst_7 = arith.constant 0.000000e+00 : f32
    %7 = vector.broadcast %cst_7 : f32 to vector<64x128xf32>
    %8 = arith.maximumf %6, %7 : vector<64x128xf32>
    %9 = vector.broadcast %2 : vector<64x1xf32> to vector<64x128xf32>
    %10 = arith.mulf %8, %9 : vector<64x128xf32>
    %cst_8 = arith.constant dense<0.000000e+00> : vector<128xf32>
    %11 = vector.multi_reduction <add>, %10, %cst_8 [0] : vector<64x128xf32> to vector<128xf32>
    %12 = vector.shape_cast %11 : vector<128xf32> to vector<1x128xf32>
    %c0_9 = arith.constant 0 : index
    %13 = memref.load %arg5[%c0_9] : memref<1xf32, #tpu.memory_space<smem>>
    %14 = vector.broadcast %13 : f32 to vector<1x128xf32>
    %15 = arith.addf %12, %14 : vector<1x128xf32>
    %c0_10 = arith.constant 0 : index
    %c0_11 = arith.constant 0 : index
    %16 = vector.load %arg6[%c0_10, %c0_11] : memref<1x128xf32, #tpu.memory_space<vmem>>, vector<1x128xf32>
    tpu.vector_store %arg6[%c0_10, %c0_11], %15 {strides = array<i32>} : memref<1x128xf32, #tpu.memory_space<vmem>>, vector<1x128xf32>,
    return
  }
  func.func @transform_0(%arg0: i32) -> (i32, i32) {
    %c0_i32 = arith.constant 0 : i32
    %c0_i32_0 = arith.constant 0 : i32
    return %c0_i32, %arg0 : i32, i32
  }
  func.func @transform_1(%arg0: i32) -> (i32, i32) {
    %c0_i32 = arith.constant 0 : i32
    %c0_i32_0 = arith.constant 0 : i32
    %c0_i32_1 = arith.constant 0 : i32
    return %c0_i32, %c0_i32_0 : i32, i32
  }
  func.func @transform_2(%arg0: i32) -> (i32, i32) {
    %c0_i32 = arith.constant 0 : i32
    %c0_i32_0 = arith.constant 0 : i32
    %c0_i32_1 = arith.constant 0 : i32
    return %c0_i32, %c0_i32_0 : i32, i32
  }
  func.func @transform_3(%arg0: i32) -> (i32, i32) {
    %c0_i32 = arith.constant 0 : i32
    %c0_i32_0 = arith.constant 0 : i32
    %c0_i32_1 = arith.constant 0 : i32
    return %c0_i32, %c0_i32_0 : i32, i32
  }
  func.func @transform_4(%arg0: i32) -> i32 {
    %c0_i32 = arith.constant 0 : i32
    %c0_i32_0 = arith.constant 0 : i32
    return %c0_i32 : i32
  }
  func.func @transform_5(%arg0: i32) -> (i32, i32) {
    %c0_i32 = arith.constant 0 : i32
    %c0_i32_0 = arith.constant 0 : i32
    return %c0_i32, %arg0 : i32, i32
  }
}

</mosaic_0001>

<bundles_post_ra>
// kernel: tpu_custom_call.1
= control target key start
LH: loop header
LB: loop body
LE: loop exit
PB: predicated region body
PF: predicated region fallthrough
CT: control target
= control target key end

     0   :  { %v284_v1 = vmov 0   ;;  %vm87_vm0 = vcmask 64512   ;;  %s405_s0 = inlined_call_operand.vmem [shape: f32[8,128], index: 0, kind: input, shape index: {}]   ;;  %s406_s1 = inlined_call_operand.vmem [shape: f32[64,8], index: 1, kind: input, shape index: {}]   ;;  %s407_s2 = inlined_call_operand.vmem [shape: f32[64,1], index: 2, kind: input, shape index: {}]   ;;  %s408_s3 = inlined_call_operand.vmem [shape: f32[64,1], index: 3, kind: input, shape index: {}]   ;;  %s409_s4 = inlined_call_operand.<no memory space> [shape: f32[1], index: 4, kind: input, shape index: {}]   ;;  %s410_s5 = inlined_call_operand.hbm [shape: f32[1,128], index: 5, kind: output, shape index: {}]  }
   0x1   :  { %v22_v0 = vld [vmem:[%s405_s0] sm:$0xff]  ;;  %257 = vset.pattern.permute.xlu2 %v284_v1  ;;  %256 = vset.pattern.permute.xlu1 %v284_v1  ;;  %v41_v3 = vld [vmem:[%s407_s2 + $0x10] sm:$0xff] }
   0x2   :  { %v43_v2 = vld [vmem:[%s407_s2 + $0x20] sm:$0xff]  ;;  %255 = vset.pattern.permute.xlu0 %v284_v1  ;;  %127 = vmatpush.msra.mxu0 %v22_v0  ;;  %v25_v6 = vld [vmem:[%s406_s1 + $0x10] sm:$0xff] }
   0x3   :  { %v39_v4 = vld [vmem:[%s407_s2] sm:$0xff]  ;;  %250 = vmatpush.msra.mxu1 %v22_v0  ;;  %251 = vmatpush.msra.mxu2 %v22_v0  ;;  %v29_v8 = vld [vmem:[%s406_s1 + $0x30] sm:$0xff] }
   0x4   :  { %v23_v5 = vld [vmem:[%s406_s1] sm:$0xff]  ;;  %69 = vperm.xlu2 %257, %v43_v2   ;;  %59 = vperm.xlu1 %256, %v41_v3  }
   0x5   :  { %v27_v7 = vld [vmem:[%s406_s1 + $0x20] sm:$0xff]  ;;  %49 = vperm.xlu0 %255, %v39_v4   ;;  %242 = vmatmul.msk.f32.vlgmr.msra.gmra.mxu0 %vm87_vm0, %v23_v5 }
   0x6   :  { %244 = vmatmul.msk.f32.vlgmr.msra.gmra.mxu1 %vm87_vm0, %v25_v6  ;;  %246 = vmatmul.msk.f32.vlgmr.msra.gmra.mxu2 %vm87_vm0, %v27_v7 }
   0x7   :  { %252 = vmatpush.msra.mxu3 %v22_v0 }
   0x8   :  { %248 = vmatmul.msk.f32.vlgmr.msra.gmra.mxu3 %vm87_vm0, %v29_v8 }
   0x9   :  { %11 = vsyncpa [#allocation4], 0  ;;  %v42_v9 = vld [vmem:[%s407_s2 + $0x18] sm:$0xff]  ;;  %v31_v10 = vld [vmem:[%s408_s3] sm:$0xff]  ;;  %s285_s15 = smov [#allocation3]   ;;  %s233_s19 = sshll.u32 %s410_s5, 4  ;;  %s234_s19 = int_to_ptr.hbm [resolvable:$true] %s233_s19 }
   0xa   :  { %v40_v11 = vld [vmem:[%s407_s2 + $0x8] sm:$0xff]  ;;  %v26_v13 = vld [vmem:[%s406_s1 + $0x18] sm:$0xff]  ;;  %v33_v16 = vld [vmem:[%s408_s3 + $0x10] sm:$0xff]  ;;  %s231_s16 = sshll.u32 %s285_s15, 4  ;;  %s232_s16 = int_to_ptr.vmem [resolvable:$true] %s231_s16 }
   0xb   :  { %v24_v12 = vld [vmem:[%s406_s1 + $0x8] sm:$0xff]  ;;  %v30_v15 = vld [vmem:[%s406_s1 + $0x38] sm:$0xff]  ;;  %v45_v19 = vld [vmem:[%s407_s2 + $0x30] sm:$0xff] }
   0xc   :  { %v28_v14 = vld [vmem:[%s406_s1 + $0x28] sm:$0xff]  ;;  %64 = vperm.xlu1 %256, %v42_v9   ;;  %163 = vperm.xlu2 %257, %v31_v10   ;;  %v35_v20 = vld [vmem:[%s408_s3 + $0x20] sm:$0xff]  ;;  %v34_v21 = vld [vmem:[%s408_s3 + $0x18] sm:$0xff] }
   0xd   :  { %54 = vperm.xlu0 %255, %v40_v11   ;;  %243 = vmatmul.msk.f32.gmra.mxu0 %vm87_vm0, %v24_v12  ;;  %v44_v17 = vld [vmem:[%s407_s2 + $0x28] sm:$0xff]  ;;  %v37_v23 = vld [vmem:[%s408_s3 + $0x30] sm:$0xff]  ;;  %v46_v24 = vld [vmem:[%s407_s2 + $0x38] sm:$0xff] }
   0xe   :  { %245 = vmatmul.msk.f32.gmra.mxu1 %vm87_vm0, %v26_v13  ;;  %247 = vmatmul.msk.f32.gmra.mxu2 %vm87_vm0, %v28_v14  ;;  %v32_v18 = vld [vmem:[%s408_s3 + $0x8] sm:$0xff]  ;;  %v38_v25 = vld [vmem:[%s408_s3 + $0x38] sm:$0xff] }
   0xf   :  { %v36_v22 = vld [vmem:[%s408_s3 + $0x28] sm:$0xff] }
  0x10   :  { %249 = vmatmul.msk.f32.gmra.mxu3 %vm87_vm0, %v30_v15 }
  0x14   :  { %173 = vperm.xlu1 %256, %v33_v16   ;;  %74 = vperm.xlu2 %257, %v44_v17  }
  0x15   :  { %168 = vperm.xlu0 %255, %v32_v18  }
  0x1c   :  { %79 = vperm.xlu1 %256, %v45_v19   ;;  %183 = vperm.xlu2 %257, %v35_v20  }
  0x1d   :  { %178 = vperm.xlu0 %255, %v34_v21  }
  0x24   :  { %188 = vperm.xlu1 %256, %v36_v22   ;;  %193 = vperm.xlu2 %257, %v37_v23   ;;  %v223_v22 = vstv %s409_s4 }
  0x25   :  { %84 = vperm.xlu0 %255, %v46_v24  }
  0x2d   :  { %198 = vperm.xlu0 %255, %v38_v25  }
  0x5e   :  { %v70_v26 = vpop.permute.xlu2 %69 }
  0x66   :  { %v164_v30 = vpop.permute.xlu2 %163 }
  0x6e   :  { %v75_v37 = vpop.permute.xlu2 %74 }
  0x76   :  { %v60_v27 = vpop.permute.xlu1 %59  ;;  %v184_v59 = vpop.permute.xlu2 %183 }
  0x77   :  { %v50_v28 = vpop.permute.xlu0 %49 }
  0x7e   :  { %v65_v29 = vpop.permute.xlu1 %64  ;;  %v194_v10 = vpop.permute.xlu2 %193 }
  0x7f   :  { %v55_v31 = vpop.permute.xlu0 %54 }
  0x82   :  { %v129_v32 = vpop.f32.mrf.mxu0 }
  0x83   :  { %v135_v33 = vpop.f32.mrf.mxu1  ;;  %v130_v35 = vadd.f32 %v129_v32, %v50_v28 }
  0x84   :  { %v136_v38 = vadd.f32 %v135_v33, %v60_v27 }
  0x85   :  { %v153_v41 = vmax.f32 %v130_v35, 0.0 }
  0x86   :  { %v174_v34 = vpop.permute.xlu1 %173  ;;  %v155_v45 = vmax.f32 %v136_v38, 0.0 }
  0x87   :  { %v169_v36 = vpop.permute.xlu0 %168  ;;  %v201_v50 = vmul.f32 %v164_v30, %v153_v41 }
  0x88   :  { %v203_v54 = vmul.f32 %v174_v34, %v155_v45 }
  0x89   :  { %v141_v39 = vpop.f32.mrf.mxu2 }
  0x8a   :  { %v132_v40 = vpop.f32.mrf.mxu0  ;;  %v142_v48 = vadd.f32 %v141_v39, %v70_v26 }
  0x8b   :  { %v133_v42 = vadd.f32 %v132_v40, %v55_v31  ;;  %v138_v43 = vpop.f32.mrf.mxu1  ;;  %v147_v47 = vpop.f32.mrf.mxu3 }
  0x8c   :  { %v139_v44 = vadd.f32 %v138_v43, %v65_v29  ;;  %v157_v57 = vmax.f32 %v142_v48, 0.0 }
  0x8d   :  { %v154_v46 = vmax.f32 %v133_v42, 0.0 }
  0x8e   :  { %v80_v49 = vpop.permute.xlu1 %79  ;;  %v156_v52 = vmax.f32 %v139_v44, 0.0  ;;  %v205_v63 = vmul.f32 %v184_v59, %v157_v57 }
  0x8f   :  { %v202_v51 = vmul.f32 %v169_v36, %v154_v46  ;;  %v179_v53 = vpop.permute.xlu0 %178  ;;  %v148_v0 = vadd.f32 %v147_v47, %v80_v49 }
  0x90   :  { %v204_v60 = vmul.f32 %v179_v53, %v156_v52 }
  0x91   :  { %v209_v55 = vadd.f32 %v202_v51, %v201_v50  ;;  %v144_v56 = vpop.f32.mrf.mxu2  ;;  %v159_v7 = vmax.f32 %v148_v0, 0.0 }
  0x92   :  { %v145_v58 = vadd.f32 %v144_v56, %v75_v37 }
  0x93   :  { %v210_v61 = vadd.f32 %v209_v55, %v203_v54  ;;  %v150_v4 = vpop.f32.mrf.mxu3  ;;  %v207_v11 = vmul.f32 %v194_v10, %v159_v7 }
  0x94   :  { %v158_v1 = vmax.f32 %v145_v58, 0.0 }
  0x95   :  { %v211_v62 = vadd.f32 %v210_v61, %v204_v60 }
  0x96   :  { %v189_v2 = vpop.permute.xlu1 %188 }
  0x97   :  { %v85_v3 = vpop.permute.xlu0 %84  ;;  %v206_v5 = vmul.f32 %v189_v2, %v158_v1  ;;  %v212_v6 = vadd.f32 %v211_v62, %v205_v63 }
  0x98   :  { %v151_v8 = vadd.f32 %v150_v4, %v85_v3 }
  0x99   :  { %v213_v9 = vadd.f32 %v212_v6, %v206_v5 }
  0x9a   :  { %v160_v12 = vmax.f32 %v151_v8, 0.0 }
  0x9b   :  { %v214_v15 = vadd.f32 %v213_v9, %v207_v11 }
  0x9f   :  { %v199_v13 = vpop.permute.xlu0 %198 }
  0xa0   :  { %v208_v14 = vmul.f32 %v199_v13, %v160_v12 }
  0xa2   :  { %v215_v16 = vadd.f32 %v214_v15, %v208_v14 }
  0xa4   :  { %v216_v17 = vrot.slane %v215_v16, 4 }
  0xa6   :  { %v217_v18 = vadd.f32 %v216_v17, %v215_v16 }
  0xa8   :  { %v218_v19 = vrot.slane %v217_v18, 2 }
  0xaa   :  { %v219_v20 = vadd.f32 %v218_v19, %v217_v18 }
  0xac   :  { %v220_v21 = vrot.slane %v219_v20, 1 }
  0xae   :  { %v221_v23 = vadd.f32 %v220_v21, %v219_v20 }
  0xb0   :  { %v224_v24 = vadd.f32 %v223_v22, %v221_v23 }
  0xb2   :  { %225 = vst [vmem:[#allocation3] sm:$0x1] %v224_v24 }
  0xb3   :  { %236 = dma.vmem_to_hbm [thread:$0]  %s232_s16, 16, %s234_s19, [#allocation4]  }
  0xb4   :  { %282 = dma.done.wait [#allocation4], 16  }
  0xb5   :  { %283 = vsyncadd [#allocation4], 4294967280 }
  0xb6   :  { %241 = vsyncpa [#allocation4], 1 }

</bundles_post_ra>
